<compile_context>
chip_gen: v5e
topology: v5e:2x2
jax: 0.10.0
libtpu: 0.0.40
codegen_flags: <defaults>
</compile_context>

<pallas_src>
import functools

import jax
import jax.numpy as jnp
from jax import lax
from jax.experimental import pallas as pl
from jax.experimental.pallas import tpu as pltpu


def _round_up(x, m):
    return (x + m - 1) // m * m


# ----------------------------------------------------------------------------
# Fused tiled matmul + bias + optional ReLU (classifier layers)
# ----------------------------------------------------------------------------
def _matmul_bias_act_kernel(x_ref, w_ref, b_ref, o_ref, acc_ref, *, apply_relu):
    k = pl.program_id(2)

    @pl.when(k == 0)
    def _():
        acc_ref[...] = jnp.zeros_like(acc_ref)

    acc_ref[...] += jnp.dot(x_ref[...], w_ref[...],
                            preferred_element_type=jnp.float32)

    @pl.when(k == pl.num_programs(2) - 1)
    def _():
        out = acc_ref[...] + b_ref[...]
        if apply_relu:
            out = jnp.maximum(out, 0.0)
        o_ref[...] = out.astype(o_ref.dtype)


def matmul_bias_act(x, w, b, *, apply_relu, out_dtype=jnp.bfloat16):
    """out = maybe_relu(x @ w + b); bf16 inputs, f32 accumulation."""
    M, K = x.shape
    _, N = w.shape
    # Tile choice: tiny M (batch) stays at 8 rows; wide N/K tiles for weights.
    tm = min(_round_up(M, 8), 128)
    tn = min(_round_up(N, 128), 512)
    tk = min(_round_up(K, 128), 2048)
    Mp, Kp, Np = _round_up(M, tm), _round_up(K, tk), _round_up(N, tn)

    xp = jnp.pad(x.astype(jnp.bfloat16), ((0, Mp - M), (0, Kp - K)))
    wp = jnp.pad(w.astype(jnp.bfloat16), ((0, Kp - K), (0, Np - N)))
    bp = jnp.pad(b.astype(jnp.float32), (0, Np - N)).reshape(1, Np)

    out = pl.pallas_call(
        functools.partial(_matmul_bias_act_kernel, apply_relu=apply_relu),
        out_shape=jax.ShapeDtypeStruct((Mp, Np), out_dtype),
        grid=(Mp // tm, Np // tn, Kp // tk),
        in_specs=[
            pl.BlockSpec((tm, tk), lambda i, j, k: (i, k)),
            pl.BlockSpec((tk, tn), lambda i, j, k: (k, j)),
            pl.BlockSpec((1, tn), lambda i, j, k: (0, j)),
        ],
        out_specs=pl.BlockSpec((tm, tn), lambda i, j, k: (i, j)),
        scratch_shapes=[pltpu.VMEM((tm, tn), jnp.float32)],
        compiler_params=pltpu.CompilerParams(
            dimension_semantics=("parallel", "parallel", "arbitrary")),
    )(xp, wp, bp)
    if (Mp, Np) != (M, N):
        out = out[:M, :N]
    return out


# ----------------------------------------------------------------------------
# Implicit-GEMM 3x3 same-padded conv + bias + ReLU
# ----------------------------------------------------------------------------
def _conv3x3_kernel(x_ref, w_ref, b_ref, o_ref):
    # x_ref: (H+2, W+2, Cin) bf16   w_ref: (3, 3, Cin, Cout) bf16
    # b_ref: (1, Cout) f32          o_ref: (H, W, Cout) bf16
    H, W, _ = o_ref.shape
    bias = b_ref[...]                                   # (1, Cout) f32

    def row_body(h, carry):
        acc = jnp.zeros(o_ref.shape[1:], jnp.float32)    # (W, Cout)
        for dy in range(3):
            row = x_ref[h + dy]                          # (W+2, Cin)
            for dx in range(3):
                acc = acc + jnp.dot(row[dx:dx + W, :], w_ref[dy, dx],
                                    preferred_element_type=jnp.float32)
        o_ref[h] = jnp.maximum(acc + bias, 0.0).astype(o_ref.dtype)
        return carry

    lax.fori_loop(0, H, row_body, 0)


def conv3x3_relu(x, w, b):
    """x: (N, H, W, Cin) bf16;  w: (3, 3, Cin, Cout) bf16;  b: (Cout,) f32."""
    N, H, W, Cin = x.shape
    Cout = w.shape[-1]
    xp = jnp.pad(x, ((0, 0), (1, 1), (1, 1), (0, 0)))      # only a 1-px halo pad
    b2 = b.reshape(1, Cout).astype(jnp.float32)

    return pl.pallas_call(
        _conv3x3_kernel,
        out_shape=jax.ShapeDtypeStruct((N, H, W, Cout), jnp.bfloat16),
        grid=(N,),
        in_specs=[
            pl.BlockSpec((None, H + 2, W + 2, Cin), lambda n: (n, 0, 0, 0)),
            pl.BlockSpec((3, 3, Cin, Cout), lambda n: (0, 0, 0, 0)),
            pl.BlockSpec((1, Cout), lambda n: (0, 0)),
        ],
        out_specs=pl.BlockSpec((None, H, W, Cout), lambda n: (n, 0, 0, 0)),
        compiler_params=pltpu.CompilerParams(
            dimension_semantics=("parallel",)),
    )(xp, w, b2)


# ----------------------------------------------------------------------------
# 2x2 stride-2 max pooling
# ----------------------------------------------------------------------------
def _maxpool_kernel(a_ref, b_ref, c_ref, d_ref, o_ref):
    o_ref[...] = jnp.maximum(jnp.maximum(a_ref[...], b_ref[...]),
                             jnp.maximum(c_ref[...], d_ref[...]))


def maxpool2x2(x):
    """x: (N, H, W, C) -> (N, H//2, W//2, C)."""
    N, H, W, C = x.shape
    Ho, Wo = H // 2, W // 2
    a = x[:, 0::2, 0::2, :]
    b = x[:, 0::2, 1::2, :]
    c = x[:, 1::2, 0::2, :]
    d = x[:, 1::2, 1::2, :]
    spec = pl.BlockSpec((None, Ho, Wo, C), lambda n: (n, 0, 0, 0))
    return pl.pallas_call(
        _maxpool_kernel,
        out_shape=jax.ShapeDtypeStruct((N, Ho, Wo, C), x.dtype),
        grid=(N,),
        in_specs=[spec, spec, spec, spec],
        out_specs=spec,
        compiler_params=pltpu.CompilerParams(
            dimension_semantics=("parallel",)),
    )(a, b, c, d)


# ----------------------------------------------------------------------------
# VGG16 definition (structure matches the PyTorch reference module)
# ----------------------------------------------------------------------------
VGG16_CFG = [64, 64, "M", 128, 128, "M", 256, 256, 256, "M",
             512, 512, 512, "M", 512, 512, 512, "M"]


def init_params(key, in_channels, num_classes, spatial):
    """He-style init; spatial must be a multiple of 32 (five 2x2 max-pools).
    For spatial=224 the classifier input is 512*7*7, exactly the PyTorch spec."""
    params = {"convs": [], "fcs": []}
    cin = in_channels
    for v in VGG16_CFG:
        if v == "M":
            continue
        key, kw = jax.random.split(key)
        fan_in = 9 * cin
        w = (jax.random.normal(kw, (3, 3, cin, v), jnp.float32)
             * jnp.sqrt(2.0 / fan_in)).astype(jnp.bfloat16)
        params["convs"].append((w, jnp.zeros((v,), jnp.float32)))
        cin = v

    feat = spatial // 32
    dims = [512 * feat * feat, 4096, 4096, num_classes]
    for din, dout in zip(dims[:-1], dims[1:]):
        key, kw = jax.random.split(key)
        w = (jax.random.normal(kw, (din, dout), jnp.float32)
             * jnp.sqrt(2.0 / din)).astype(jnp.bfloat16)
        params["fcs"].append((w, jnp.zeros((dout,), jnp.float32)))
    return params


def vgg16_forward(params, x_nchw):
    # PyTorch NCHW input -> NHWC bf16 for the conv kernels.
    x = jnp.transpose(x_nchw, (0, 2, 3, 1)).astype(jnp.bfloat16)
    ci = 0
    for v in VGG16_CFG:
        if v == "M":
            x = maxpool2x2(x)
        else:
            w, b = params["convs"][ci]
            x = conv3x3_relu(x, w, b)
            ci += 1

    # torch.flatten(x, 1) flattens NCHW; transpose back so the order matches.
    x = jnp.transpose(x, (0, 3, 1, 2)).reshape(x.shape[0], -1)

    # Classifier.  TODO(synk): Dropout(p=0.5) is identity (eval mode).
    w1, b1 = params["fcs"][0]
    x = matmul_bias_act(x, w1, b1, apply_relu=True)
    w2, b2 = params["fcs"][1]
    x = matmul_bias_act(x, w2, b2, apply_relu=True)
    w3, b3 = params["fcs"][2]
    x = matmul_bias_act(x, w3, b3, apply_relu=False, out_dtype=jnp.float32)
    return x


if __name__ == "__main__":
    key = jax.random.PRNGKey(0)
    key, kp, kx = jax.random.split(key, 3)

    # Small shapes (previous 224x224 run timed out under the interpreter):
    # batch=2, 3 input channels, 32x32 spatial -> 1x1x512 features -> 10 classes.
    batch, in_channels, spatial, num_classes = 2, 3, 32, 10
    params = init_params(kp, in_channels, num_classes, spatial)
    x = jax.random.normal(kx, (batch, in_channels, spatial, spatial), jnp.float32)

    out = vgg16_forward(params, x)
    out = jax.block_until_ready(out)
    assert out.shape == (batch, num_classes), out.shape
    assert bool(jnp.all(jnp.isfinite(out)))
    print("KERNEL_OK")
</pallas_src>

<mosaic_0001>
module attributes {stable_mosaic.version = 11 : i64} {
  func.func @_conv3x3_kernel(%arg0: i32, %arg1: memref<1x34x34x3xbf16, #tpu.memory_space<vmem>>, %arg2: memref<3x3x3x64xbf16, #tpu.memory_space<vmem>>, %arg3: memref<1x64xf32, #tpu.memory_space<vmem>>, %arg4: memref<1x32x32x64xbf16, #tpu.memory_space<vmem>>) attributes {dimension_semantics = [#tpu.dimension_semantics<parallel>], iteration_bounds = array<i64: 2>, scalar_prefetch = 0 : i64, scratch_operands = 0 : i64, tpu.core_type = #tpu.core_type<tc>, window_params = [{transform_indices = @transform_0, window_bounds = array<i64: 1, 34, 34, 3>}, {pipeline_mode = #tpu.pipeline_mode<synchronous>, transform_indices = @transform_1, window_bounds = array<i64: 3, 3, 3, 64>}, {pipeline_mode = #tpu.pipeline_mode<synchronous>, transform_indices = @transform_2, window_bounds = array<i64: 1, 64>}, {transform_indices = @transform_3, window_bounds = array<i64: 1, 32, 32, 64>}]} {
    %c0 = arith.constant 0 : index
    %c0_0 = arith.constant 0 : index
    %0 = vector.load %arg3[%c0, %c0_0] : memref<1x64xf32, #tpu.memory_space<vmem>>, vector<1x64xf32>
    %c0_i32 = arith.constant 0 : i32
    %c32_i32 = arith.constant 32 : i32
    %1 = arith.addi %c0_i32, %c32_i32 : i32
    %c1_i32 = arith.constant 1 : i32
    scf.for %arg5 = %c0_i32 to %1 step %c1_i32  : i32 {
      %cst = arith.constant 0.000000e+00 : f32
      %2 = vector.broadcast %cst : f32 to vector<32x64xf32>
      %c0_i32_2 = arith.constant 0 : i32
      %3 = arith.addi %arg5, %c0_i32_2 : i32
      %c0_3 = arith.constant 0 : index
      %4 = arith.index_cast %3 : i32 to index
      %c0_4 = arith.constant 0 : index
      %c0_5 = arith.constant 0 : index
      %5 = vector.load %arg1[%c0_3, %4, %c0_4, %c0_5] : memref<1x34x34x3xbf16, #tpu.memory_space<vmem>>, vector<1x1x34x3xbf16>
      %6 = vector.shape_cast %5 : vector<1x1x34x3xbf16> to vector<34x3xbf16>
      %7 = vector.extract_strided_slice %6 {offsets = [0, 0], sizes = [32, 3], strides = [1, 1]} : vector<34x3xbf16> to vector<32x3xbf16>
      %c0_6 = arith.constant 0 : index
      %c0_7 = arith.constant 0 : index
      %c0_8 = arith.constant 0 : index
      %c0_9 = arith.constant 0 : index
      %8 = vector.load %arg2[%c0_6, %c0_7, %c0_8, %c0_9] : memref<3x3x3x64xbf16, #tpu.memory_space<vmem>>, vector<1x1x3x64xbf16>
      %9 = vector.shape_cast %8 : vector<1x1x3x64xbf16> to vector<3x64xbf16>
      %cst_10 = arith.constant dense<0.000000e+00> : vector<32x64xf32>
      %10 = tpu.matmul %7, %9, %cst_10 {dimension_numbers = #tpu.dot_dimension_numbers<[1], [0], [0], [1], [0, 0, 1, 1], [], []>} : vector<32x3xbf16>, vector<3x64xbf16>, vector<32x64xf32> -> vector<32x64xf32>
      %11 = arith.addf %2, %10 : vector<32x64xf32>
      %12 = vector.extract_strided_slice %6 {offsets = [1, 0], sizes = [32, 3], strides = [1, 1]} : vector<34x3xbf16> to vector<32x3xbf16>
      %c0_11 = arith.constant 0 : index
      %c1 = arith.constant 1 : index
      %c0_12 = arith.constant 0 : index
      %c0_13 = arith.constant 0 : index
      %13 = vector.load %arg2[%c0_11, %c1, %c0_12, %c0_13] : memref<3x3x3x64xbf16, #tpu.memory_space<vmem>>, vector<1x1x3x64xbf16>
      %14 = vector.shape_cast %13 : vector<1x1x3x64xbf16> to vector<3x64xbf16>
      %cst_14 = arith.constant dense<0.000000e+00> : vector<32x64xf32>
      %15 = tpu.matmul %12, %14, %cst_14 {dimension_numbers = #tpu.dot_dimension_numbers<[1], [0], [0], [1], [0, 0, 1, 1], [], []>} : vector<32x3xbf16>, vector<3x64xbf16>, vector<32x64xf32> -> vector<32x64xf32>
      %16 = arith.addf %11, %15 : vector<32x64xf32>
      %17 = vector.extract_strided_slice %6 {offsets = [2, 0], sizes = [32, 3], strides = [1, 1]} : vector<34x3xbf16> to vector<32x3xbf16>
      %c0_15 = arith.constant 0 : index
      %c2 = arith.constant 2 : index
      %c0_16 = arith.constant 0 : index
      %c0_17 = arith.constant 0 : index
      %18 = vector.load %arg2[%c0_15, %c2, %c0_16, %c0_17] : memref<3x3x3x64xbf16, #tpu.memory_space<vmem>>, vector<1x1x3x64xbf16>
      %19 = vector.shape_cast %18 : vector<1x1x3x64xbf16> to vector<3x64xbf16>
      %cst_18 = arith.constant dense<0.000000e+00> : vector<32x64xf32>
      %20 = tpu.matmul %17, %19, %cst_18 {dimension_numbers = #tpu.dot_dimension_numbers<[1], [0], [0], [1], [0, 0, 1, 1], [], []>} : vector<32x3xbf16>, vector<3x64xbf16>, vector<32x64xf32> -> vector<32x64xf32>
      %21 = arith.addf %16, %20 : vector<32x64xf32>
      %c1_i32_19 = arith.constant 1 : i32
      %22 = arith.addi %arg5, %c1_i32_19 : i32
      %c0_20 = arith.constant 0 : index
      %23 = arith.index_cast %22 : i32 to index
      %c0_21 = arith.constant 0 : index
      %c0_22 = arith.constant 0 : index
      %24 = vector.load %arg1[%c0_20, %23, %c0_21, %c0_22] : memref<1x34x34x3xbf16, #tpu.memory_space<vmem>>, vector<1x1x34x3xbf16>
      %25 = vector.shape_cast %24 : vector<1x1x34x3xbf16> to vector<34x3xbf16>
      %26 = vector.extract_strided_slice %25 {offsets = [0, 0], sizes = [32, 3], strides = [1, 1]} : vector<34x3xbf16> to vector<32x3xbf16>
      %c1_23 = arith.constant 1 : index
      %c0_24 = arith.constant 0 : index
      %c0_25 = arith.constant 0 : index
      %c0_26 = arith.constant 0 : index
      %27 = vector.load %arg2[%c1_23, %c0_24, %c0_25, %c0_26] : memref<3x3x3x64xbf16, #tpu.memory_space<vmem>>, vector<1x1x3x64xbf16>
      %28 = vector.shape_cast %27 : vector<1x1x3x64xbf16> to vector<3x64xbf16>
      %cst_27 = arith.constant dense<0.000000e+00> : vector<32x64xf32>
      %29 = tpu.matmul %26, %28, %cst_27 {dimension_numbers = #tpu.dot_dimension_numbers<[1], [0], [0], [1], [0, 0, 1, 1], [], []>} : vector<32x3xbf16>, vector<3x64xbf16>, vector<32x64xf32> -> vector<32x64xf32>
      %30 = arith.addf %21, %29 : vector<32x64xf32>
      %31 = vector.extract_strided_slice %25 {offsets = [1, 0], sizes = [32, 3], strides = [1, 1]} : vector<34x3xbf16> to vector<32x3xbf16>
      %c1_28 = arith.constant 1 : index
      %c1_29 = arith.constant 1 : index
      %c0_30 = arith.constant 0 : index
      %c0_31 = arith.constant 0 : index
      %32 = vector.load %arg2[%c1_28, %c1_29, %c0_30, %c0_31] : memref<3x3x3x64xbf16, #tpu.memory_space<vmem>>, vector<1x1x3x64xbf16>
      %33 = vector.shape_cast %32 : vector<1x1x3x64xbf16> to vector<3x64xbf16>
      %cst_32 = arith.constant dense<0.000000e+00> : vector<32x64xf32>
      %34 = tpu.matmul %31, %33, %cst_32 {dimension_numbers = #tpu.dot_dimension_numbers<[1], [0], [0], [1], [0, 0, 1, 1], [], []>} : vector<32x3xbf16>, vector<3x64xbf16>, vector<32x64xf32> -> vector<32x64xf32>
      %35 = arith.addf %30, %34 : vector<32x64xf32>
      %36 = vector.extract_strided_slice %25 {offsets = [2, 0], sizes = [32, 3], strides = [1, 1]} : vector<34x3xbf16> to vector<32x3xbf16>
      %c1_33 = arith.constant 1 : index
      %c2_34 = arith.constant 2 : index
      %c0_35 = arith.constant 0 : index
      %c0_36 = arith.constant 0 : index
      %37 = vector.load %arg2[%c1_33, %c2_34, %c0_35, %c0_36] : memref<3x3x3x64xbf16, #tpu.memory_space<vmem>>, vector<1x1x3x64xbf16>
      %38 = vector.shape_cast %37 : vector<1x1x3x64xbf16> to vector<3x64xbf16>
      %cst_37 = arith.constant dense<0.000000e+00> : vector<32x64xf32>
      %39 = tpu.matmul %36, %38, %cst_37 {dimension_numbers = #tpu.dot_dimension_numbers<[1], [0], [0], [1], [0, 0, 1, 1], [], []>} : vector<32x3xbf16>, vector<3x64xbf16>, vector<32x64xf32> -> vector<32x64xf32>
      %40 = arith.addf %35, %39 : vector<32x64xf32>
      %c2_i32 = arith.constant 2 : i32
      %41 = arith.addi %arg5, %c2_i32 : i32
      %c0_38 = arith.constant 0 : index
      %42 = arith.index_cast %41 : i32 to index
      %c0_39 = arith.constant 0 : index
      %c0_40 = arith.constant 0 : index
      %43 = vector.load %arg1[%c0_38, %42, %c0_39, %c0_40] : memref<1x34x34x3xbf16, #tpu.memory_space<vmem>>, vector<1x1x34x3xbf16>
      %44 = vector.shape_cast %43 : vector<1x1x34x3xbf16> to vector<34x3xbf16>
      %45 = vector.extract_strided_slice %44 {offsets = [0, 0], sizes = [32, 3], strides = [1, 1]} : vector<34x3xbf16> to vector<32x3xbf16>
      %c2_41 = arith.constant 2 : index
      %c0_42 = arith.constant 0 : index
      %c0_43 = arith.constant 0 : index
      %c0_44 = arith.constant 0 : index
      %46 = vector.load %arg2[%c2_41, %c0_42, %c0_43, %c0_44] : memref<3x3x3x64xbf16, #tpu.memory_space<vmem>>, vector<1x1x3x64xbf16>
      %47 = vector.shape_cast %46 : vector<1x1x3x64xbf16> to vector<3x64xbf16>
      %cst_45 = arith.constant dense<0.000000e+00> : vector<32x64xf32>
      %48 = tpu.matmul %45, %47, %cst_45 {dimension_numbers = #tpu.dot_dimension_numbers<[1], [0], [0], [1], [0, 0, 1, 1], [], []>} : vector<32x3xbf16>, vector<3x64xbf16>, vector<32x64xf32> -> vector<32x64xf32>
      %49 = arith.addf %40, %48 : vector<32x64xf32>
      %50 = vector.extract_strided_slice %44 {offsets = [1, 0], sizes = [32, 3], strides = [1, 1]} : vector<34x3xbf16> to vector<32x3xbf16>
      %c2_46 = arith.constant 2 : index
      %c1_47 = arith.constant 1 : index
      %c0_48 = arith.constant 0 : index
      %c0_49 = arith.constant 0 : index
      %51 = vector.load %arg2[%c2_46, %c1_47, %c0_48, %c0_49] : memref<3x3x3x64xbf16, #tpu.memory_space<vmem>>, vector<1x1x3x64xbf16>
      %52 = vector.shape_cast %51 : vector<1x1x3x64xbf16> to vector<3x64xbf16>
      %cst_50 = arith.constant dense<0.000000e+00> : vector<32x64xf32>
      %53 = tpu.matmul %50, %52, %cst_50 {dimension_numbers = #tpu.dot_dimension_numbers<[1], [0], [0], [1], [0, 0, 1, 1], [], []>} : vector<32x3xbf16>, vector<3x64xbf16>, vector<32x64xf32> -> vector<32x64xf32>
      %54 = arith.addf %49, %53 : vector<32x64xf32>
      %55 = vector.extract_strided_slice %44 {offsets = [2, 0], sizes = [32, 3], strides = [1, 1]} : vector<34x3xbf16> to vector<32x3xbf16>
      %c2_51 = arith.constant 2 : index
      %c2_52 = arith.constant 2 : index
      %c0_53 = arith.constant 0 : index
      %c0_54 = arith.constant 0 : index
      %56 = vector.load %arg2[%c2_51, %c2_52, %c0_53, %c0_54] : memref<3x3x3x64xbf16, #tpu.memory_space<vmem>>, vector<1x1x3x64xbf16>
      %57 = vector.shape_cast %56 : vector<1x1x3x64xbf16> to vector<3x64xbf16>
      %cst_55 = arith.constant dense<0.000000e+00> : vector<32x64xf32>
      %58 = tpu.matmul %55, %57, %cst_55 {dimension_numbers = #tpu.dot_dimension_numbers<[1], [0], [0], [1], [0, 0, 1, 1], [], []>} : vector<32x3xbf16>, vector<3x64xbf16>, vector<32x64xf32> -> vector<32x64xf32>
      %59 = arith.addf %54, %58 : vector<32x64xf32>
      %60 = vector.broadcast %0 : vector<1x64xf32> to vector<32x64xf32>
      %61 = arith.addf %59, %60 : vector<32x64xf32>
      %cst_56 = arith.constant 0.000000e+00 : f32
      %62 = vector.broadcast %cst_56 : f32 to vector<32x64xf32>
      %63 = arith.maximumf %61, %62 : vector<32x64xf32>
      %64 = arith.truncf %63 : vector<32x64xf32> to vector<32x64xbf16>
      %c0_57 = arith.constant 0 : index
      %65 = arith.index_cast %arg5 : i32 to index
      %c0_58 = arith.constant 0 : index
      %c0_59 = arith.constant 0 : index
      %66 = vector.load %arg4[%c0_57, %65, %c0_58, %c0_59] : memref<1x32x32x64xbf16, #tpu.memory_space<vmem>>, vector<1x1x32x64xbf16>
      %67 = vector.shape_cast %66 : vector<1x1x32x64xbf16> to vector<32x64xbf16>
      %68 = vector.shape_cast %64 : vector<32x64xbf16> to vector<1x1x32x64xbf16>
      tpu.vector_store %arg4[%c0_57, %65, %c0_58, %c0_59], %68 {strides = array<i32>} : memref<1x32x32x64xbf16, #tpu.memory_space<vmem>>, vector<1x1x32x64xbf16>,
    }
    %c32_i32_1 = arith.constant 32 : i32
    return
  }
  func.func @transform_0(%arg0: i32) -> (i32, i32, i32, i32) {
    %c0_i32 = arith.constant 0 : i32
    %c0_i32_0 = arith.constant 0 : i32
    %c0_i32_1 = arith.constant 0 : i32
    %c0_i32_2 = arith.constant 0 : i32
    return %arg0, %c0_i32, %c0_i32_0, %c0_i32_1 : i32, i32, i32, i32
  }
  func.func @transform_1(%arg0: i32) -> (i32, i32, i32, i32) {
    %c0_i32 = arith.constant 0 : i32
    %c0_i32_0 = arith.constant 0 : i32
    %c0_i32_1 = arith.constant 0 : i32
    %c0_i32_2 = arith.constant 0 : i32
    %c0_i32_3 = arith.constant 0 : i32
    return %c0_i32, %c0_i32_0, %c0_i32_1, %c0_i32_2 : i32, i32, i32, i32
  }
  func.func @transform_2(%arg0: i32) -> (i32, i32) {
    %c0_i32 = arith.constant 0 : i32
    %c0_i32_0 = arith.constant 0 : i32
    %c0_i32_1 = arith.constant 0 : i32
    return %c0_i32, %c0_i32_0 : i32, i32
  }
  func.func @transform_3(%arg0: i32) -> (i32, i32, i32, i32) {
    %c0_i32 = arith.constant 0 : i32
    %c0_i32_0 = arith.constant 0 : i32
    %c0_i32_1 = arith.constant 0 : i32
    %c0_i32_2 = arith.constant 0 : i32
    return %arg0, %c0_i32, %c0_i32_0, %c0_i32_1 : i32, i32, i32, i32
  }
}

</mosaic_0001>

<bundles_post_ra>
// kernel: tpu_custom_call.1
= control target key start
LH: loop header
LB: loop body
LE: loop exit
PB: predicated region body
PF: predicated region fallthrough
CT: control target
= control target key end

     0   :  { %8 = vsyncpa [#allocation3], 0  ;;  %s1166_s0 = inlined_call_operand.vmem [shape: bf16[2,34,34,3], index: 0, kind: input, shape index: {}]   ;;  %s1167_s1 = inlined_call_operand.vmem [shape: bf16[3,3,3,64], index: 1, kind: input, shape index: {}]   ;;  %s1168_s2 = inlined_call_operand.vmem [shape: f32[1,64], index: 2, kind: input, shape index: {}]   ;;  %s1169_s3 = inlined_call_operand.hbm [shape: bf16[2,32,32,64], index: 3, kind: output, shape index: {}]  }
   0x1   :  { %10 = vsyncpa [#allocation3 + $0x1], 0  ;;  %s961_s12 = smov 0   ;;  %s963_s13 = smov 0  }
   0x2   :  { %s965_s14 = smov 0   ;;  %s967_s15 = smov 0  }
   0x3 LB: > { %s982_s16 = sadd.s32 4294967295, %s932_s15   ;;  %s731_s17 = sadd.s32 4294967294, %s932_s15   ;;  %s932_s15 = sphi %s967_s15, %s1175_s15   ;;  %s928_s14 = sphi %s965_s14, %s1174_s14   ;;  %s924_s13 = sphi %s963_s13, %s1173_s13   ;;  %s920_s12 = sphi %s961_s12, %s1172_s12  }
   0x4   : > { %s986_s18 = sadd.s32 1, %s932_s15   ;;  %s91_s19 = sadd.s32 1, %s928_s14 }
   0x5   : > { %s88_s20 = ssub.s32 %s932_s15, %s986_s18  ;;  %p101_p0 = scmp.ne.s32.totalorder %s928_s14, %s924_s13 }
   0x6   : > { %p89_p1 = scmp.eq.s32.totalorder %s88_s20, 0  ;;  %p102_p2 = scmp.eq.s32.totalorder %s982_s16, 1 }
   0x7   : > { %p107_p3 = scmp.ne.s32.totalorder %s924_s13, %s920_s12  ;;  %p108_p4 = scmp.eq.s32.totalorder %s731_s17, 1 }
   0x8   : > { %s997_s21 = scalar_select %p89_p1, %s928_s14, %s91_s19  }
   0x9   : > { %p999_p5 = por %p102_p2, %p101_p0  ;;  %p1003_p6 = por %p108_p4, %p107_p3 }
   0xa   : > { %p734_p7 = scmp.ge.s32.totalorder %s932_s15, 1  ;;  %p140_p8 = scmp.lt.s32.totalorder %s932_s15, 3 }
   0xc   : > { %p141_p9 = pnand %p734_p7, %p140_p8 }
   0xd   : > { %s161_s24 = sand.u32 (!%p141_p9), 1, %s924_s13   ;;  %p164_p10 = scmp.lt.s32.totalorder (!%p141_p9), %s982_s16, 1 }
   0xe   : > { %144 = sbr.rel (%p141_p9) target bundleno = 254 (0xfe), region = 32  ;;  %s1018_s27 = sshll.u32 (!%p141_p9), %s161_s24, 9 }
   0xf   : > { %s163_s6 = scalar_lea.vmem (!%p141_p9), [#allocation2], %s1018_s27  ;;  %s1027_s7 = smov (!%p141_p9), 0  }
  0x13   : > { %v1014_v0 = vld [vmem:[%s1168_s2] sm:$0x1]  ;;  %s165_s28 = scalar_select %p164_p10, %s982_s16, 1 }
  0x15   : > { %s815_s29 = smul.u32 680, %s165_s28 }
  0x17   : > { %s1024_s5 = scalar_lea.vmem %s1166_s0, %s815_s29 }
  0x18 LB: >> { %v738_v1 = vld [vmem:[%s1167_s1 + $0x2] sm:$0x3]  ;;  %vm229_vm0 = vcmask 1040384   ;;  %vm230_vm1 = vcmask 1041408   ;;  %v938_v2 = vmov 65535   ;;  %s805_s17 = smul.u32 20, %s936_s7  ;;  %s936_s7 = sphi %s1027_s7, %s176_s7  }
  0x19   : >> { %v231_v3 = vsel %vm229_vm0, 4294967295, %v938_v2  ;;  %v185_v4 = vld [vmem:[%s1167_s1] sm:$0x3]  ;;  %v751_v6 = vld [vmem:[%s1167_s1 + $0x4] sm:$0x3]  ;;  %vm283_vm2 = vcmask 1046528  }
  0x1a   : >> { %v232_v5 = vsel %vm230_vm1, %v231_v3, 0  ;;  %v759_v7 = vld [vmem:[%s1167_s1 + $0x6] sm:$0x3]  ;;  %v770_v12 = vld [vmem:[%s1167_s1 + $0x8] sm:$0x3]  ;;  %s1055_s10 = scalar_lea.vmem %s1024_s5, %s805_s17  ;;  %vm222_vm3 = vcmask 23552  }
  0x1b   : >> { %v234_v8 = vand.u32 %v738_v1, %v232_v5  ;;  %v260_v9 = vand.u32 %v232_v5, %v185_v4  ;;  %v296_v10 = vand.u32 %v751_v6, %v232_v5  ;;  %v349_v11 = vand.u32 %v759_v7, %v232_v5  ;;  %v781_v13 = vld [vmem:[%s1167_s1 + $0xc] sm:$0x3]  ;;  %v792_v14 = vld [vmem:[%s1167_s1 + $0xe] sm:$0x3]  ;;  %v806_v18 = vld [vmem:[%s1055_s10] sm:$0xff]  ;;  %s812_s25 = sshll.u32 %s936_s7, 4 }
  0x1c   : >> { %v404_v15 = vand.u32 %v770_v12, %v232_v5  ;;  %v496_v16 = vand.u32 %v781_v13, %v232_v5  ;;  %v551_v17 = vand.u32 %v792_v14, %v232_v5  ;;  %v1059_v19 = vld [vmem:[%s1055_s10 + $0x8] sm:$0xff]  ;;  %v184_v20 = vld [vmem:[%s1055_s10 + $0x10] sm:$0x1]  ;;  %v1063_v22 = vld [vmem:[%s1055_s10 + $0x14] sm:$0xff]  ;;  %v203_v23 = vshrl.u32 %v806_v18, 16  ;;  %s1118_s26 = scalar_lea.vmem %s163_s6, %s812_s25 [#allocation2]  ;;  %s176_s7 = sadd.s32 1, %s936_s7  }
  0x1d   : >> { %243 = vmatpush.bf16.msra.mxu0 %v234_v8  ;;  %814 = vmatpush.bf16.msra.mxu1 %v234_v8  ;;  %v197_v21 = vunpack.c.l.b16 %v184_v20  ;;  %v205_v24 = vshll.u32 %v806_v18, 16  ;;  %v210_v25 = vshll.u32 %v1059_v19, 16  ;;  %v214_v26 = vshrl.u32 %v1059_v19, 16  ;;  %v795_v30 = vld [vmem:[%s1167_s1 + $0x10] sm:$0x3]  ;;  %v809_v43 = vld [vmem:[%s1055_s10 + $0x1c] sm:$0xff] }
  0x1e   : >> { %305 = vmatpush.bf16.msra.mxu2 %v296_v10  ;;  %358 = vmatpush.bf16.msra.mxu3 %v349_v11  ;;  %v284_v28 = vrot.slane %v806_v18, 1  ;;  %v285_v29 = vrot.slane %v1059_v19, 1  ;;  %v773_v33 = vld [vmem:[%s1167_s1 + $0xa] sm:$0x3]  ;;  %vm201_vm4 = vsmask.f32 7424  ;;  %v590_v38 = vand.u32 %v795_v30, %v232_v5 }
  0x1f   : >> { %v200_v27 = vpack.c.b16 %v197_v21, %v197_v21  ;;  %v207_v31 = vrot.slane %v205_v24, 1  ;;  %v212_v32 = vrot.slane %v210_v25, 1  ;;  %v443_v40 = vand.u32 %v773_v33, %v232_v5  ;;  %v810_v51 = vld [vmem:[%s1055_s10 + $0x28] sm:$0xff]  ;;  %v758_v53 = vld [vmem:[%s1055_s10 + $0x24] sm:$0x1]  ;;  %v811_v56 = vld [vmem:[%s1055_s10 + $0x30] sm:$0xff] }
  0x20   : >> { %v286_v35 = vsel %vm283_vm2, %v284_v28, %v285_v29  ;;  %v381_v44 = vshll.u32 %v1063_v22, 16  ;;  %v379_v45 = vshrl.u32 %v1063_v22, 16  ;;  %v385_v47 = vshll.u32 %v809_v43, 16  ;;  %v780_v3 = vld [vmem:[%s1055_s10 + $0x38] sm:$0x1]  ;;  %p173_p11 = scmp.ge.s32.totalorder %s176_s7, 32  }
  0x21   : >> { %269 = vmatpush.bf16.msrb.mxu1 %v260_v9  ;;  %413 = vmatpush.bf16.msrb.mxu0 %v404_v15  ;;  %v218_v34 = vshll.u32 %v200_v27, 16  ;;  %v208_v36 = vor.u32 %v207_v31, %v203_v23  ;;  %v216_v37 = vor.u32 %v214_v26, %v212_v32  ;;  %v287_v48 = vrot.slane %v200_v27, 1  ;;  %s813_s28 = sshll.u32 (%p173_p11), %s982_s16, 9  ;;  %s651_s8 = sshll.u32 (%p173_p11), %s163_s6, 4  ;;  %s652_s8 = int_to_ptr.vmem [resolvable:$true] %s651_s8 }
  0x22   : >> { %505 = vmatpush.bf16.msrb.mxu2 %v496_v16  ;;  %560 = vmatpush.bf16.msrb.mxu3 %v551_v17  ;;  %v383_v46 = vrot.slane %v381_v44, 1  ;;  %v387_v50 = vrot.slane %v385_v47, 1  ;;  %v377_v55 = vunpack.c.l.b16 %v758_v53  ;;  %v528_v57 = vshll.u32 %v810_v51, 16  ;;  %s650_s4 = scalar_lea.hbm (%p173_p11), %s1169_s3, %s813_s28  ;;  %s639_s10 = scalar_lea.sflag (%p173_p11), [#allocation3], %s161_s24 }
  0x23   : >> { %768 = vmatmul.msk.bf16.vlgmr.msra.gmra.mxu3 %vm222_vm3, %v1063_v22  ;;  %752 = vmatmul.msk.bf16.vlgmr.msra.gmra.mxu2 %vm222_vm3, %v286_v35  ;;  %v220_v39 = vrot.slane %v218_v34, 1  ;;  %v213_v41 = vsel %vm201_vm4, %v208_v36, %v212_v32  ;;  %v288_v52 = vsel %vm283_vm2, %v285_v29, %v287_v48  ;;  %v526_v59 = vshrl.u32 %v810_v51, 16  ;;  %s653_s9 = sshll.u32 (%p173_p11), %s650_s4, 4  ;;  %s886_s17 = scalar_lea.hbm (%p173_p11), %s1169_s3, 1024  ;;  %s654_s9 = int_to_ptr.hbm [resolvable:$true] %s653_s9 }
  0x24   : >> { %747 = vmatmul.msk.bf16.vlgmr.msra.gmra.mxu0 %vm222_vm3, %v213_v41  ;;  %v384_v49 = vor.u32 %v383_v46, %v379_v45  ;;  %v378_v58 = vpack.c.b16 %v377_v55, %v377_v55  ;;  %v530_v60 = vrot.slane %v528_v57, 1  ;;  %v532_v61 = vshll.u32 %v811_v56, 16  ;;  %s880_s11 = sshra.s32 (%p173_p11), %s654_s9, 4  ;;  %s881_s11 = int_to_ptr.hbm [resolvable:$true] %s880_s11 }
  0x25   : >> { %v221_v42 = vsel %vm201_vm4, %v216_v37, %v220_v39  ;;  %599 = vmatpush.bf16.msra.mxu0 %v590_v38  ;;  %v389_v62 = vshrl.u32 %v809_v43, 16  ;;  %v524_v7 = vunpack.c.l.b16 %v780_v3  ;;  %v536_v10 = vshrl.u32 %v811_v56, 16  ;;  %s882_s7 = scalar_lea.hbm (%p173_p11), %s881_s11, 512  ;;  %p887_p1 = scmp.lt.s32.totalorder (%p173_p11), %s881_s11, %s1169_s3 }
  0x26   : >> { %748 = vmatmul.msk.bf16.vlgmr.msra.gmra.mxu1 %vm222_vm3, %v221_v42  ;;  %v388_v54 = vsel %vm201_vm4, %v384_v49, %v387_v50  ;;  %v393_v63 = vshll.u32 %v378_v58, 16  ;;  %v531_v1 = vor.u32 %v530_v60, %v526_v59  ;;  %v534_v2 = vrot.slane %v532_v61, 1  ;;  %p883_p12 = scmp.ne.s32.totalorder (%p173_p11), %s881_s11, %s882_s7  ;;  %p888_p2 = scmp.lt.s32.totalorder (%p173_p11), %s886_s17, %s882_s7 }
  0x27   : >> { %452 = vmatpush.bf16.msra.mxu1 %v443_v40  ;;  %v391_v4 = vor.u32 %v389_v62, %v387_v50  ;;  %v525_v9 = vpack.c.b16 %v524_v7, %v524_v7  ;;  %v578_v14 = vrot.slane %v810_v51, 1  ;;  %v579_v15 = vrot.slane %v811_v56, 1 }
  0x28   : >> { %v395_v5 = vrot.slane %v393_v63, 1  ;;  %v535_v6 = vsel %vm201_vm4, %v531_v1, %v534_v2  ;;  %v538_v12 = vor.u32 %v536_v10, %v534_v2  ;;  %v431_v17 = vrot.slane %v1063_v22, 1  ;;  %p884_p13 = pnand (%p173_p11), %p883_p12, %p999_p5  ;;  %p889_p3 = por (%p173_p11), %p888_p2, %p887_p1 }
  0x29   : >> { %v540_v11 = vshll.u32 %v525_v9, 16  ;;  %v580_v20 = vsel %vm283_vm2, %v578_v14, %v579_v15  ;;  %v434_v23 = vrot.slane %v378_v58, 1  ;;  %v616_v60 = vperm.slane %v1014_v0, 0 }
  0x2a   : >> { %v396_v8 = vsel %vm201_vm4, %v391_v4, %v395_v5  ;;  %vm633_vm5 = vcmask 519168   ;;  %p885_p0 = pneg (%p173_p11), %p884_p13 }
  0x2b   : >> { %v542_v13 = vrot.slane %v540_v11, 1 }
  0x2c   : > { %p890_p4 = pnand (%p173_p11), %p889_p3, %p885_p0 }
  0x2d   : >> { %v543_v16 = vsel %vm201_vm4, %v538_v12, %v542_v13 }
  0x33   : >> { %769 = vmatmul.msk.bf16.gmra.mxu3 %vm222_vm3, %v809_v43  ;;  %753 = vmatmul.msk.bf16.gmra.mxu2 %vm222_vm3, %v288_v52 }
  0x34   : >> { %771 = vmatmul.msk.bf16.vlgmr.msrb.gmra.mxu0 %vm222_vm3, %v388_v54 }
  0x36   : >> { %749 = vmatmul.msk.bf16.vlgmr.msrb.gmra.mxu1 %vm222_vm3, %v806_v18  ;;  %v432_v18 = vrot.slane %v809_v43, 1 }
  0x38   : >> { %v433_v21 = vsel %vm283_vm2, %v431_v17, %v432_v18  ;;  %v435_v25 = vsel %vm283_vm2, %v432_v18, %v434_v23 }
  0x43   : >> { %793 = vmatmul.msk.bf16.vlgmr.msrb.gmra.mxu3 %vm222_vm3, %v535_v6  ;;  %790 = vmatmul.msk.bf16.vlgmr.msrb.gmra.mxu2 %vm222_vm3, %v810_v51 }
  0x44   : >> { %772 = vmatmul.msk.bf16.gmra.mxu0 %vm222_vm3, %v396_v8 }
  0x46   : >> { %750 = vmatmul.msk.bf16.gmra.mxu1 %vm222_vm3, %v1059_v19  ;;  %v581_v19 = vrot.slane %v525_v9, 1 }
  0x48   : >> { %v582_v24 = vsel %vm283_vm2, %v579_v15, %v581_v19 }
  0x53   : >> { %794 = vmatmul.msk.bf16.gmra.mxu3 %vm222_vm3, %v543_v16  ;;  %791 = vmatmul.msk.bf16.gmra.mxu2 %vm222_vm3, %v811_v56 }
  0x54   : >> { %796 = vmatmul.msk.bf16.vlgmr.msra.gmra.mxu0 %vm222_vm3, %v580_v20 }
  0x56   : >> { %774 = vmatmul.msk.bf16.vlgmr.msra.gmra.mxu1 %vm222_vm3, %v433_v21 }
  0x64   : >> { %797 = vmatmul.msk.bf16.gmra.mxu0 %vm222_vm3, %v582_v24 }
  0x66   : >> { %775 = vmatmul.msk.bf16.gmra.mxu1 %vm222_vm3, %v435_v25 }
  0xa1   : >> { %v245_v22 = vpop.f32.mrf.mxu0 }
  0xa3   : >> { %v250_v26 = vpop.f32.mrf.mxu1 }
  0xa6   : >> { %v307_v27 = vpop.f32.mrf.mxu2  ;;  %v360_v28 = vpop.f32.mrf.mxu3 }
  0xa9   : >> { %v247_v29 = vpop.f32.mrf.mxu0 }
  0xab   : >> { %v252_v30 = vpop.f32.mrf.mxu1 }
  0xae   : >> { %v309_v31 = vpop.f32.mrf.mxu2  ;;  %v362_v34 = vpop.f32.mrf.mxu3 }
  0xb1   : >> { %v415_v32 = vpop.f32.mrf.mxu0 }
  0xb3   : >> { %v271_v33 = vpop.f32.mrf.mxu1 }
  0xb4   : >> { %v272_v42 = vadd.f32 %v271_v33, %v245_v22 }
  0xb6   : >> { %v312_v37 = vpop.f32.mrf.mxu2  ;;  %v365_v38 = vpop.f32.mrf.mxu3  ;;  %v317_v44 = vadd.f32 %v307_v27, %v272_v42 }
  0xb8   : >> { %v370_v47 = vadd.f32 %v360_v28, %v317_v44 }
  0xb9   : >> { %v417_v35 = vpop.f32.mrf.mxu0 }
  0xba   : >> { %v425_v51 = vadd.f32 %v415_v32, %v370_v47 }
  0xbb   : >> { %v273_v36 = vpop.f32.mrf.mxu1 }
  0xbc   : >> { %v274_v48 = vadd.f32 %v273_v36, %v247_v29 }
  0xbe   : >> { %v314_v41 = vpop.f32.mrf.mxu2  ;;  %v367_v43 = vpop.f32.mrf.mxu3  ;;  %v318_v52 = vadd.f32 %v309_v31, %v274_v48 }
  0xc0   : >> { %v371_v56 = vadd.f32 %v362_v34, %v318_v52 }
  0xc1   : >> { %v420_v39 = vpop.f32.mrf.mxu0 }
  0xc2   : >> { %v426_v62 = vadd.f32 %v417_v35, %v371_v56 }
  0xc3   : >> { %v276_v40 = vpop.f32.mrf.mxu1 }
  0xc4   : >> { %v277_v57 = vadd.f32 %v276_v40, %v250_v26 }
  0xc6   : >> { %v507_v49 = vpop.f32.mrf.mxu2  ;;  %v562_v50 = vpop.f32.mrf.mxu3  ;;  %v319_v63 = vadd.f32 %v312_v37, %v277_v57 }
  0xc8   : >> { %v372_v7 = vadd.f32 %v365_v38, %v319_v63 }
  0xc9   : >> { %v422_v45 = vpop.f32.mrf.mxu0 }
  0xca   : >> { %v427_v13 = vadd.f32 %v420_v39, %v372_v7 }
  0xcb   : >> { %v278_v46 = vpop.f32.mrf.mxu1 }
  0xcc   : >> { %v279_v8 = vadd.f32 %v278_v46, %v252_v30 }
  0xce   : >> { %v509_v61 = vpop.f32.mrf.mxu2  ;;  %v564_v2 = vpop.f32.mrf.mxu3  ;;  %v320_v14 = vadd.f32 %v314_v41, %v279_v8 }
  0xd0   : >> { %v373_v19 = vadd.f32 %v367_v43, %v320_v14 }
  0xd1   : >> { %v601_v54 = vpop.f32.mrf.mxu0 }
  0xd2   : >> { %v428_v27 = vadd.f32 %v422_v45, %v373_v19 }
  0xd3   : >> { %v454_v53 = vpop.f32.mrf.mxu1 }
  0xd4   : >> { %v464_v55 = vadd.f32 %v454_v53, %v425_v51 }
  0xd6   : >> { %v517_v58 = vadd.f32 %v507_v49, %v464_v55  ;;  %v512_v16 = vpop.f32.mrf.mxu2  ;;  %v567_v21 = vpop.f32.mrf.mxu3 }
  0xd8   : >> { %v572_v59 = vadd.f32 %v562_v50, %v517_v58 }
  0xd9   : >> { %v603_v6 = vpop.f32.mrf.mxu0 }
  0xda   : >> { %v611_v1 = vadd.f32 %v601_v54, %v572_v59 }
  0xdb   : >> { %v456_v3 = vpop.f32.mrf.mxu1 }
  0xdc   : >> { %v618_v4 = vadd.f32 %v616_v60, %v611_v1  ;;  %v465_v5 = vadd.f32 %v456_v3, %v426_v62 }
  0xde   : >> { %v622_v9 = vmax.f32 %v618_v4, 0.0  ;;  %v518_v10 = vadd.f32 %v509_v61, %v465_v5  ;;  %v514_v32 = vpop.f32.mrf.mxu2  ;;  %v569_v35 = vpop.f32.mrf.mxu3 }
  0xe0   : >> { %v626_v11 = vpack.c.bf16 %v622_v9, %v622_v9  ;;  %v573_v12 = vadd.f32 %v564_v2, %v518_v10 }
  0xe1   : >> { %v606_v25 = vpop.f32.mrf.mxu0 }
  0xe2   : >> { %634 = vst.msk [vmem:[%s1118_s26] sm:$0xf] %vm633_vm5, %v626_v11  ;;  %v612_v15 = vadd.f32 %v603_v6, %v573_v12 }
  0xe3   : >> { %v459_v17 = vpop.f32.mrf.mxu1 }
  0xe4   : >> { %v619_v18 = vadd.f32 %v616_v60, %v612_v15  ;;  %v466_v20 = vadd.f32 %v459_v17, %v427_v13 }
  0xe6   : >> { %v623_v23 = vmax.f32 %v619_v18, 0.0  ;;  %v519_v24 = vadd.f32 %v512_v16, %v466_v20 }
  0xe8   : >> { %v627_v22 = vpack.c.bf16 %v623_v23, %v623_v23  ;;  %v574_v26 = vadd.f32 %v567_v21, %v519_v24 }
  0xe9   : >> { %v608_v38 = vpop.f32.mrf.mxu0 }
  0xea   : >> { %635 = vst.msk [vmem:[%s1118_s26 + $0x4] sm:$0xf] %vm633_vm5, %v627_v22  ;;  %v613_v28 = vadd.f32 %v606_v25, %v574_v26 }
  0xeb   : >> { %v461_v29 = vpop.f32.mrf.mxu1 }
  0xec   : >> { %v620_v30 = vadd.f32 %v616_v60, %v613_v28  ;;  %v467_v31 = vadd.f32 %v461_v29, %v428_v27 }
  0xee   : >> { %v624_v33 = vmax.f32 %v620_v30, 0.0  ;;  %v520_v34 = vadd.f32 %v514_v32, %v467_v31 }
  0xf0   : >> { %v628_v36 = vpack.c.bf16 %v624_v33, %v624_v33  ;;  %v575_v37 = vadd.f32 %v569_v35, %v520_v34 }
  0xf2   : >> { %636 = vst.msk [vmem:[%s1118_s26 + $0x8] sm:$0xf] %vm633_vm5, %v628_v36  ;;  %v614_v39 = vadd.f32 %v608_v38, %v575_v37 }
  0xf4   : >> { %v621_v40 = vadd.f32 %v616_v60, %v614_v39 }
  0xf6   : >> { %v625_v41 = vmax.f32 %v621_v40, 0.0  ;;  %175 = sbr.rel (!%p173_p11) target bundleno = 24 (0x18), region = 86 }
  0xf8   : >> { %v629_v42 = vpack.c.bf16 %v625_v41, %v625_v41 }
  0xfa   : >> { %637 = vst.msk [vmem:[%s1118_s26 + $0xc] sm:$0xf] %vm633_vm5, %v629_v42 }
  0xfb   : > { %893 = shalt.err (!%p890_p4)
}
  0xfc   : > { %s939_s24 = smov 64   ;;  %s940_s27 = smov 4  }
  0xfd   : > { %816 = dma.vmem_to_hbm [thread:$0]  (%p999_p5), %s652_s8, 8192, %s654_s9, %s639_s10, %s939_s24, %s939_s24, %s940_s27  }
  0xfe PF: > { %p822_p7 = scmp.ge.s32.totalorder %s932_s15, 2  ;;  %s668_s6 = sand.u32 1, %s920_s12  }
  0xff   : > { %s669_s25 = scalar_lea.sflag [#allocation3], %s668_s6 }
 0x100   : > { %p819_p8 = pnand %p822_p7, %p1003_p6 }
 0x102   : > { %p820_p9 = pneg %p819_p8 }
 0x104   : > { %915 = dma.done.wait (%p820_p9), %s669_s25, 8192  }
 0x105   : > { %917 = vsyncadd (%p820_p9), %s669_s25, 4294959104  ;;  %p13_p10 = scmp.ge.s32.totalorder %s986_s18, 4   ;;  %s1172_s12 = smov %s924_s13 }
 0x106   : > { %s1173_s13 = smov %s928_s14  ;;  %s1174_s14 = smov %s997_s21 }
 0x107   : > { %s1175_s15 = smov %s986_s18  ;;  %15 = sbr.rel (!%p13_p10) target bundleno = 3 (0x3), region = 97 }
 0x10c   :  { %675 = vsyncpa [#allocation3], 1 }
 0x10d   :  { %677 = vsyncpa [#allocation3 + $0x1], 1 }

</bundles_post_ra>
